<compile_context>
chip_gen: v7x
topology: tpu7x:2x2x1
jax: 0.10.0
libtpu: 0.0.40
codegen_flags: <defaults>
</compile_context>

<pallas_src>
import functools

import jax
import jax.numpy as jnp
from jax.experimental import pallas as pl
from jax.experimental.pallas import tpu as pltpu

_LANES = 128        # lane-dense output width (policy + value packed in one slab)
_NEG_BIG = -1e30    # "minus infinity" used to mask non-action lanes in softmax


def actor_critic_kernel(state_ref, w1_ref, b1_ref, wh_ref, bh_ref, out_ref, *,
                        action_size):
    # hidden = relu(state @ W1 + b1)  -- bf16 MXU operands, f32 accumulation.
    hidden = jnp.dot(state_ref[...].astype(jnp.bfloat16), w1_ref[...],
                     preferred_element_type=jnp.float32)
    hidden = jnp.maximum(hidden + b1_ref[...], 0.0)

    # Single fused head matmul: lanes [0, A) are action logits, lane A is the
    # state value, lanes > A are zero padding.
    heads = jnp.dot(hidden.astype(jnp.bfloat16), wh_ref[...],
                    preferred_element_type=jnp.float32) + bh_ref[...]

    lane = jax.lax.broadcasted_iota(jnp.int32, heads.shape, 1)
    is_action = lane < action_size

    # Softmax over the action lanes only; value + pad lanes are masked to
    # -1e30, whose exp underflows to exactly 0 in f32.
    logits = jnp.where(is_action, heads, _NEG_BIG)
    m = jnp.max(logits, axis=-1, keepdims=True)
    e = jnp.exp(logits - m)
    denom = jnp.sum(e, axis=-1, keepdims=True)
    policy = e / denom          # exact divide: rows sum to 1 to f32 precision

    # Lane-dense output slab: [policy (A lanes) | value (lane A) | zeros].
    out_ref[...] = jnp.where(is_action, policy, heads)


def pack_params(w1, b1, wa, ba, wv, bv):
    """One-time packing of the ActorCritic parameters for the fused kernel."""
    H = w1.shape[1]
    A = wa.shape[1]
    assert A + 1 <= _LANES, "action_size + value column must fit in 128 lanes"
    pad = _LANES - A - 1
    w_heads = jnp.concatenate([wa, wv, jnp.zeros((H, pad), wa.dtype)], axis=1)
    b_heads = jnp.concatenate([ba, bv, jnp.zeros((1, pad), ba.dtype)], axis=1)
    return dict(
        w1=w1.astype(jnp.bfloat16),                     # MXU operand -> bf16
        b1=b1.astype(jnp.float32).reshape(1, H),        # biases stay f32
        w_heads=w_heads.astype(jnp.bfloat16),
        b_heads=b_heads.astype(jnp.float32),
        action_size=A,
    )


def _default_batch_tiles():
    # v7x has two TensorCores per chip: give the "parallel" batch axis two grid
    # steps so both cores get work.  v5e / v6e have one TC -> one whole-batch
    # step (per-grid-step overhead dominates at these shapes).
    try:
        kind = jax.devices()[0].device_kind.lower()
    except Exception:
        return 1
    return 2 if "v7" in kind else 1


def actor_critic_forward(state, params, *, batch_tiles=None):
    """Fused ActorCritic forward.  Returns the (B, 128) lane-dense slab."""
    B, S = state.shape
    H = params["w1"].shape[1]
    A = params["action_size"]

    if batch_tiles is None:
        batch_tiles = _default_batch_tiles()
    batch_tiles = max(1, min(int(batch_tiles), B))

    # Batch tile: ceil(B / tiles), rounded up to the 8-row sublane multiple.
    # If that covers the whole batch, use a single full-extent block (no 8-row
    # divisibility constraint applies to a full-dim block).  No wrapper-side
    # padding copy; a ragged tail block (B not a multiple of tb) is handled by
    # Pallas and only touches dropped rows.
    tb = -(-B // batch_tiles)
    tb = ((tb + 7) // 8) * 8
    if tb >= B:
        tb = B
    grid = (pl.cdiv(B, tb),)

    kernel = functools.partial(actor_critic_kernel, action_size=A)

    return pl.pallas_call(
        kernel,
        out_shape=jax.ShapeDtypeStruct((B, _LANES), jnp.float32),
        grid_spec=pltpu.PrefetchScalarGridSpec(
            num_scalar_prefetch=0,
            grid=grid,
            in_specs=[
                pl.BlockSpec((tb, S), lambda i: (i, 0)),        # state tile
                pl.BlockSpec((S, H), lambda i: (0, 0)),         # W1 (VMEM resident)
                pl.BlockSpec((1, H), lambda i: (0, 0)),         # b1
                pl.BlockSpec((H, _LANES), lambda i: (0, 0)),    # fused heads W
                pl.BlockSpec((1, _LANES), lambda i: (0, 0)),    # fused heads b
            ],
            out_specs=pl.BlockSpec((tb, _LANES), lambda i: (i, 0)),
        ),
        compiler_params=pltpu.CompilerParams(
            dimension_semantics=("parallel",)),   # megacore-shard batch on v7x
    )(state, params["w1"], params["b1"], params["w_heads"], params["b_heads"])


def split_policy_value(slab, action_size):
    """Consumer-side view of the lane-dense slab -> (policy, state_value)."""
    return slab[:, :action_size], slab[:, action_size:action_size + 1]


def init_params(key, state_size, hidden_size, action_size):
    """PyTorch-style Linear init (uniform +-1/sqrt(fan_in)); W is (in, out)."""
    ks = jax.random.split(key, 6)

    def lin(kw, kb, fan_in, fan_out):
        bound = 1.0 / jnp.sqrt(jnp.float32(fan_in))
        w = jax.random.uniform(kw, (fan_in, fan_out), jnp.float32, -bound, bound)
        b = jax.random.uniform(kb, (1, fan_out), jnp.float32, -bound, bound)
        return w, b

    w1, b1 = lin(ks[0], ks[1], state_size, hidden_size)    # state_to_hidden
    wa, ba = lin(ks[2], ks[3], hidden_size, action_size)   # action_layer
    wv, bv = lin(ks[4], ks[5], hidden_size, 1)             # value_layer
    return w1, b1, wa, ba, wv, bv


def reference_forward(state, w1, b1, wa, ba, wv, bv):
    """Mixed-precision reference matching the kernel (bf16 MXU operands,
    f32 accumulation and element-wise math)."""
    bf = jnp.bfloat16
    hidden = jnp.dot(state.astype(bf), w1.astype(bf),
                     preferred_element_type=jnp.float32) + b1
    hidden = jnp.maximum(hidden, 0.0)
    value = jnp.dot(hidden.astype(bf), wv.astype(bf),
                    preferred_element_type=jnp.float32) + bv
    logits = jnp.dot(hidden.astype(bf), wa.astype(bf),
                     preferred_element_type=jnp.float32) + ba
    policy = jax.nn.softmax(logits, axis=-1)
    return policy, value


if __name__ == "__main__":
    key = jax.random.PRNGKey(0)
    k_state, k_params = jax.random.split(key)

    # Small module-consistent shapes: hidden=256 is fixed by the module; pick a
    # small state/action size and a batch that exercises both the single-tile
    # and the two-tile (v7x-style) grid paths.
    B, STATE, HIDDEN, ACTION = 32, 16, 256, 8

    state = jax.random.normal(k_state, (B, STATE), jnp.float32)
    raw_params = init_params(k_params, STATE, HIDDEN, ACTION)
    packed = pack_params(*raw_params)

    ref_policy, ref_value = reference_forward(state, *raw_params)

    for tiles in (None, 2):   # None = device default (1 on v5e/v6e, 2 on v7x)
        slab = actor_critic_forward(state, packed, batch_tiles=tiles)
        slab = jax.block_until_ready(slab)
        policy, value = split_policy_value(slab, ACTION)

        assert policy.shape == (B, ACTION) and value.shape == (B, 1)
        assert jnp.allclose(value, ref_value, atol=1e-4, rtol=1e-4), "value mismatch"
        assert jnp.allclose(policy, ref_policy, atol=2e-4, rtol=2e-4), "policy mismatch"
        assert jnp.allclose(jnp.sum(policy, axis=-1), 1.0, atol=1e-4), "softmax norm"

    print("KERNEL_OK")
</pallas_src>

<mosaic_0001>
module attributes {stable_mosaic.version = 11 : i64} {
  func.func @actor_critic_kernel(%arg0: i32, %arg1: memref<32x16xf32, #tpu.memory_space<vmem>>, %arg2: memref<16x256xbf16, #tpu.memory_space<vmem>>, %arg3: memref<1x256xf32, #tpu.memory_space<vmem>>, %arg4: memref<256x128xbf16, #tpu.memory_space<vmem>>, %arg5: memref<1x128xf32, #tpu.memory_space<vmem>>, %arg6: memref<32x128xf32, #tpu.memory_space<vmem>>) attributes {dimension_semantics = [#tpu.dimension_semantics<parallel>], iteration_bounds = array<i64: 1>, scalar_prefetch = 0 : i64, scratch_operands = 0 : i64, tpu.core_type = #tpu.core_type<tc>, window_params = [{transform_indices = @transform_0, window_bounds = array<i64: 32, 16>}, {pipeline_mode = #tpu.pipeline_mode<synchronous>, transform_indices = @transform_1, window_bounds = array<i64: 16, 256>}, {pipeline_mode = #tpu.pipeline_mode<synchronous>, transform_indices = @transform_2, window_bounds = array<i64: 1, 256>}, {pipeline_mode = #tpu.pipeline_mode<synchronous>, transform_indices = @transform_3, window_bounds = array<i64: 256, 128>}, {pipeline_mode = #tpu.pipeline_mode<synchronous>, transform_indices = @transform_4, window_bounds = array<i64: 1, 128>}, {transform_indices = @transform_5, window_bounds = array<i64: 32, 128>}]} {
    %c0 = arith.constant 0 : index
    %c0_0 = arith.constant 0 : index
    %0 = vector.load %arg1[%c0, %c0_0] : memref<32x16xf32, #tpu.memory_space<vmem>>, vector<32x16xf32>
    %1 = arith.truncf %0 : vector<32x16xf32> to vector<32x16xbf16>
    %c0_1 = arith.constant 0 : index
    %c0_2 = arith.constant 0 : index
    %2 = vector.load %arg2[%c0_1, %c0_2] : memref<16x256xbf16, #tpu.memory_space<vmem>>, vector<16x256xbf16>
    %cst = arith.constant dense<0.000000e+00> : vector<32x256xf32>
    %3 = tpu.matmul %1, %2, %cst {dimension_numbers = #tpu.dot_dimension_numbers<[1], [0], [0], [1], [0, 0, 1, 1], [], []>} : vector<32x16xbf16>, vector<16x256xbf16>, vector<32x256xf32> -> vector<32x256xf32>
    %c0_3 = arith.constant 0 : index
    %c0_4 = arith.constant 0 : index
    %4 = vector.load %arg3[%c0_3, %c0_4] : memref<1x256xf32, #tpu.memory_space<vmem>>, vector<1x256xf32>
    %5 = vector.broadcast %4 : vector<1x256xf32> to vector<32x256xf32>
    %6 = arith.addf %3, %5 : vector<32x256xf32>
    %cst_5 = arith.constant 0.000000e+00 : f32
    %7 = vector.broadcast %cst_5 : f32 to vector<32x256xf32>
    %8 = arith.maximumf %6, %7 : vector<32x256xf32>
    %9 = arith.truncf %8 : vector<32x256xf32> to vector<32x256xbf16>
    %c0_6 = arith.constant 0 : index
    %c0_7 = arith.constant 0 : index
    %10 = vector.load %arg4[%c0_6, %c0_7] : memref<256x128xbf16, #tpu.memory_space<vmem>>, vector<256x128xbf16>
    %cst_8 = arith.constant dense<0.000000e+00> : vector<32x128xf32>
    %11 = tpu.matmul %9, %10, %cst_8 {dimension_numbers = #tpu.dot_dimension_numbers<[1], [0], [0], [1], [0, 0, 1, 1], [], []>} : vector<32x256xbf16>, vector<256x128xbf16>, vector<32x128xf32> -> vector<32x128xf32>
    %c0_9 = arith.constant 0 : index
    %c0_10 = arith.constant 0 : index
    %12 = vector.load %arg5[%c0_9, %c0_10] : memref<1x128xf32, #tpu.memory_space<vmem>>, vector<1x128xf32>
    %13 = vector.broadcast %12 : vector<1x128xf32> to vector<32x128xf32>
    %14 = arith.addf %11, %13 : vector<32x128xf32>
    %15 = tpu.iota {dimensions = array<i32: 1>} : vector<32x128xi32>
    %c8_i32 = arith.constant 8 : i32
    %16 = vector.broadcast %c8_i32 : i32 to vector<32x128xi32>
    %17 = arith.cmpi slt, %15, %16 : vector<32x128xi32>
    %cst_11 = arith.constant -1.000000e+30 : f32
    %18 = vector.broadcast %cst_11 : f32 to vector<32x128xf32>
    %19 = arith.select %17, %14, %18 : vector<32x128xi1>, vector<32x128xf32>
    %cst_12 = arith.constant dense<0xFF800000> : vector<32xf32>
    %20 = vector.multi_reduction <maximumf>, %19, %cst_12 [1] : vector<32x128xf32> to vector<32xf32>
    %21 = vector.shape_cast %20 : vector<32xf32> to vector<32x1xf32>
    %22 = vector.broadcast %21 : vector<32x1xf32> to vector<32x128xf32>
    %23 = arith.subf %19, %22 : vector<32x128xf32>
    %24 = math.exp %23 : vector<32x128xf32>
    %cst_13 = arith.constant dense<0.000000e+00> : vector<32xf32>
    %25 = vector.multi_reduction <add>, %24, %cst_13 [1] : vector<32x128xf32> to vector<32xf32>
    %26 = vector.shape_cast %25 : vector<32xf32> to vector<32x1xf32>
    %27 = vector.broadcast %26 : vector<32x1xf32> to vector<32x128xf32>
    %28 = arith.divf %24, %27 : vector<32x128xf32>
    %29 = arith.select %17, %28, %14 : vector<32x128xi1>, vector<32x128xf32>
    %c0_14 = arith.constant 0 : index
    %c0_15 = arith.constant 0 : index
    %30 = vector.load %arg6[%c0_14, %c0_15] : memref<32x128xf32, #tpu.memory_space<vmem>>, vector<32x128xf32>
    tpu.vector_store %arg6[%c0_14, %c0_15], %29 {strides = array<i32>} : memref<32x128xf32, #tpu.memory_space<vmem>>, vector<32x128xf32>,
    return
  }
  func.func @transform_0(%arg0: i32) -> (i32, i32) {
    %c0_i32 = arith.constant 0 : i32
    %c0_i32_0 = arith.constant 0 : i32
    return %arg0, %c0_i32 : i32, i32
  }
  func.func @transform_1(%arg0: i32) -> (i32, i32) {
    %c0_i32 = arith.constant 0 : i32
    %c0_i32_0 = arith.constant 0 : i32
    %c0_i32_1 = arith.constant 0 : i32
    return %c0_i32, %c0_i32_0 : i32, i32
  }
  func.func @transform_2(%arg0: i32) -> (i32, i32) {
    %c0_i32 = arith.constant 0 : i32
    %c0_i32_0 = arith.constant 0 : i32
    %c0_i32_1 = arith.constant 0 : i32
    return %c0_i32, %c0_i32_0 : i32, i32
  }
  func.func @transform_3(%arg0: i32) -> (i32, i32) {
    %c0_i32 = arith.constant 0 : i32
    %c0_i32_0 = arith.constant 0 : i32
    %c0_i32_1 = arith.constant 0 : i32
    return %c0_i32, %c0_i32_0 : i32, i32
  }
  func.func @transform_4(%arg0: i32) -> (i32, i32) {
    %c0_i32 = arith.constant 0 : i32
    %c0_i32_0 = arith.constant 0 : i32
    %c0_i32_1 = arith.constant 0 : i32
    return %c0_i32, %c0_i32_0 : i32, i32
  }
  func.func @transform_5(%arg0: i32) -> (i32, i32) {
    %c0_i32 = arith.constant 0 : i32
    %c0_i32_0 = arith.constant 0 : i32
    return %arg0, %c0_i32 : i32, i32
  }
}

</mosaic_0001>

<bundles_post_ra>
// kernel: tpu_custom_call.1
= control target key start
LH: loop header
LB: loop body
LE: loop exit
PB: predicated region body
PF: predicated region fallthrough
CT: control target
= control target key end

     0   :  { %10 = vsyncpa [#allocation3], 0  ;;  %s651_s0 = inlined_call_operand.vmem [shape: f32[32,16], index: 0, kind: input, shape index: {}]   ;;  %s652_s1 = inlined_call_operand.vmem [shape: bf16[16,256], index: 1, kind: input, shape index: {}]   ;;  %s653_s2 = inlined_call_operand.vmem [shape: f32[1,256], index: 2, kind: input, shape index: {}]   ;;  %s654_s3 = inlined_call_operand.hbm [shape: bf16[256,128], index: 3, kind: input, shape index: {}]   ;;  %s655_s4 = inlined_call_operand.vmem [shape: f32[1,128], index: 4, kind: input, shape index: {}]   ;;  %s656_s5 = inlined_call_operand.hbm [shape: f32[32,128], index: 5, kind: output, shape index: {}]  }
   0x1   :  { %11 = vsyncpa [#allocation4], 0  ;;  %s545_s18 = smov [#allocation2]   ;;  %s497_s22 = scalar_lea.hbm %s654_s3, 2048 }
   0x2   :  { %s23_s19 = sshll.u32 %s545_s18, 4  ;;  %p498_p0 = scmp.ne.s32.totalorder %s654_s3, %s497_s22  ;;  %s24_s19 = int_to_ptr.vmem [resolvable:$true] %s23_s19 }
   0x3   :  { %p501_p1 = scmp.lt.u32.totalorder %s497_s22, %s654_s3 }
   0x5   :  { %p503_p2 = pnand %p501_p1, %p498_p0 }
   0x7   :  { %506 = shalt.err (!%p503_p2)
}
   0x8   :  { %s507_s27 = scalar_lea.vmem %s24_s19, 2048  ;;  %p512_p4 = scmp.lt.s32.totalorder %s24_s19, %s24_s19 }
   0x9   :  { %p508_p3 = scmp.ne.s32.totalorder %s24_s19, %s507_s27  ;;  %p513_p5 = scmp.lt.s32.totalorder %s507_s27, %s507_s27 }
   0xb   :  { %p514_p6 = por %p513_p5, %p512_p4 }
   0xd   :  { %p515_p7 = pnand %p514_p6, %p508_p3 }
   0xf   :  { %518 = shalt.err (!%p515_p7)
}
  0x10   :  { %s546_s28 = smov 64   ;;  %s547_s29 = smov 4  }
  0x11   :  { %29 = dma.hbm_to_vmem [thread:$0]  %s654_s3, 2048, %s24_s19, [#allocation3], %s546_s28, %s546_s28, %s547_s29  }
  0x12   :  { %541 = dma.done.wait [#allocation3], 2048  }
  0x13   :  { %542 = vsyncadd [#allocation3], 4294965248  ;;  %v548_v0 = vmov 0   ;;  %v462_v1 = vld [vmem:[%s652_s1 + $0x4] ss:$8 sps:$4 sm:$0xff]   ;;  %vm66_vm0 = vcmask 130048   ;;  %v46_v25 = vlaneseq }
  0x14   :  { %105 = vmatprep.mubr.bf16.mxu0 %v548_v0  ;;  %v464_v2 = vld [vmem:[%s652_s1] ss:$8 sps:$4 sm:$0xff]   ;;  %73 = vmatprep.subr.bf16.mxu0 %v462_v1  ;;  %v38_v8 = vld [vmem:[%s651_s0 + $0x10] sm:$0xff]  ;;  %v39_v10 = vld [vmem:[%s651_s0 + $0x18] sm:$0xff] }
  0x15   :  { %v36_v3 = vld [vmem:[%s651_s0] sm:$0xff]  ;;  %v37_v4 = vld [vmem:[%s651_s0 + $0x8] sm:$0xff]  ;;  %74 = vmatpush1.bf16.msra.mxu0 %v464_v2  ;;  %v469_v12 = vld [vmem:[#allocation2 + $0x50] sm:$0xff]   ;;  %v41_v13 = vpack.c.bf16 %v39_v10, %v38_v8  ;;  %v47_v26 = vshrl.u32 %v46_v25, 7  ;;  %v617_v60 = vand.u32 127, %v46_v25 }
  0x16   :  { %v40_v5 = vpack.c.bf16 %v37_v4, %v36_v3  ;;  %v465_v6 = vld [vmem:[#allocation2 + $0x40] sm:$0xff]   ;;  %v467_v9 = vld [vmem:[#allocation2 + $0x48] sm:$0xff]   ;;  %v470_v14 = vld [vmem:[#allocation2 + $0x10] sm:$0xff]  }
  0x17   :  { %v466_v7 = vld [vmem:[#allocation2] sm:$0xff]   ;;  %411 = vmatprep.subr.bf16.mxu0 %v465_v6  ;;  %439 = vmatprep.subr.bf16.mxu1 %v465_v6  ;;  %v468_v11 = vld [vmem:[#allocation2 + $0x8] sm:$0xff]   ;;  %v471_v15 = vld [vmem:[#allocation2 + $0x58] sm:$0xff]   ;;  %v48_v27 = vsub.s32 0, %v47_v26  ;;  %v52_v29 = vsub.s32 1, %v47_v26  ;;  %vm324_vm1 = vcmp.lt.s32.totalorder %v617_v60, 8 }
  0x18   :  { %392 = vmatmul.mubr.msk.bf16.vlgmr.msra.gmra.mrb[0].mxu0 %vm66_vm0, %v40_v5  ;;  %447 = vmatpush3.bf16.msra.mxu1 %v466_v7  ;;  %v472_v16 = vld [vmem:[#allocation2 + $0x18] sm:$0xff]   ;;  %v473_v17 = vld [vmem:[#allocation2 + $0x60] sm:$0xff]   ;;  %v475_v19 = vld [vmem:[#allocation2 + $0x68] sm:$0xff]  }
  0x19   :  { %115 = vmatprep.mubr.bf16.mxu0 %v548_v0  ;;  %412 = vmatpush3.bf16.msra.mxu0 %v466_v7  ;;  %v474_v18 = vld [vmem:[#allocation2 + $0x20] sm:$0xff]   ;;  %v476_v20 = vld [vmem:[#allocation2 + $0x28] sm:$0xff]   ;;  %v477_v21 = vld [vmem:[#allocation2 + $0x70] sm:$0xff]  }
  0x1a   :  { %413 = vmatprep.subr.bf16.mxu0 %v467_v9  ;;  %440 = vmatprep.subr.bf16.mxu1 %v467_v9  ;;  %v478_v22 = vld [vmem:[#allocation2 + $0x30] sm:$0xff]   ;;  %v479_v23 = vld [vmem:[#allocation2 + $0x78] sm:$0xff]   ;;  %v44_v28 = vld [vmem:[%s653_s2] sm:$0x3] }
  0x1b   :  { %v480_v24 = vld [vmem:[#allocation2 + $0x38] sm:$0xff]   ;;  %v49_v30 = vrot.slane %v44_v28, %v48_v27  ;;  %v53_v31 = vrot.slane %v44_v28, %v52_v29  ;;  %v394_v63 = vld [vmem:[%s655_s4] ss:$0 sm:$0xff]  ;;  %s549_s4 = smov [#allocation5]  }
  0x1c   :  { %448 = vmatpush3.bf16.msra.mxu1 %v468_v11  ;;  %s378_s19 = sshll.u32 %s549_s4, 4  ;;  %s379_s19 = int_to_ptr.vmem [resolvable:$true] %s378_s19 }
  0x1d   :  { %414 = vmatpush3.bf16.msra.mxu0 %v468_v11  ;;  %441 = vmatprep.subr.bf16.mxu1 %v469_v12  ;;  %s519_s20 = scalar_lea.vmem %s379_s19, 512  ;;  %p524_p9 = scmp.lt.s32.totalorder %s379_s19, %s379_s19 }
  0x1e   :  { %415 = vmatprep.subr.bf16.mxu0 %v469_v12  ;;  %p520_p8 = scmp.ne.s32.totalorder %s379_s19, %s519_s20  ;;  %p525_p10 = scmp.lt.s32.totalorder %s519_s20, %s519_s20 }
  0x20   :  { %393 = vmatmul.mubr.msk.bf16.gmra.mrb[4].mxu0 %vm66_vm0, %v41_v13  ;;  %449 = vmatpush3.bf16.msra.mxu1 %v470_v14  ;;  %p526_p11 = por %p525_p10, %p524_p9 }
  0x21   :  { %416 = vmatpush3.bf16.msra.mxu0 %v470_v14  ;;  %442 = vmatprep.subr.bf16.mxu1 %v471_v15 }
  0x22   :  { %417 = vmatprep.subr.bf16.mxu0 %v471_v15  ;;  %p527_p12 = pnand %p526_p11, %p520_p8 }
  0x24   :  { %450 = vmatpush3.bf16.msra.mxu1 %v472_v16 }
  0x25   :  { %418 = vmatpush3.bf16.msra.mxu0 %v472_v16  ;;  %443 = vmatprep.subr.bf16.mxu1 %v473_v17 }
  0x26   :  { %419 = vmatprep.subr.bf16.mxu0 %v473_v17 }
  0x28   :  { %451 = vmatpush3.bf16.msra.mxu1 %v474_v18 }
  0x29   :  { %420 = vmatpush3.bf16.msra.mxu0 %v474_v18  ;;  %444 = vmatprep.subr.bf16.mxu1 %v475_v19 }
  0x2a   :  { %421 = vmatprep.subr.bf16.mxu0 %v475_v19 }
  0x2c   :  { %452 = vmatpush3.bf16.msra.mxu1 %v476_v20 }
  0x2d   :  { %422 = vmatpush3.bf16.msra.mxu0 %v476_v20  ;;  %445 = vmatprep.subr.bf16.mxu1 %v477_v21 }
  0x2e   :  { %423 = vmatprep.subr.bf16.mxu0 %v477_v21 }
  0x30   :  { %453 = vmatpush3.bf16.msra.mxu1 %v478_v22 }
  0x31   :  { %424 = vmatpush3.bf16.msra.mxu0 %v478_v22  ;;  %446 = vmatprep.subr.bf16.mxu1 %v479_v23 }
  0x32   :  { %425 = vmatprep.subr.bf16.mxu0 %v479_v23 }
  0x34   :  { %454 = vmatpush3.bf16.msra.mxu1 %v480_v24 }
  0x35   :  { %426 = vmatpush3.bf16.msra.mxu0 %v480_v24 }
  0xeb   :  { %v107_v32 = vpop.f32.mrb[0].mxu0 }
  0xec   :  { %v108_v33 = vadd.f32 %v107_v32, %v49_v30  ;;  %v109_v34 = vpop.f32.mrb[1].mxu0 }
  0xed   :  { %v110_v35 = vadd.f32 %v109_v34, %v53_v31  ;;  %v111_v36 = vpop.f32.mrb[2].mxu0 }
  0xee   :  { %v112_v37 = vadd.f32 %v111_v36, %v49_v30  ;;  %v113_v38 = vpop.f32.mrb[3].mxu0  ;;  %v126_v40 = vmax.f32 %v108_v33, 0.0 }
  0xef   :  { %v114_v39 = vadd.f32 %v113_v38, %v53_v31  ;;  %v127_v42 = vmax.f32 %v110_v35, 0.0 }
  0xf0   :  { %v128_v41 = vmax.f32 %v112_v37, 0.0 }
  0xf1   :  { %v129_v43 = vmax.f32 %v114_v39, 0.0 }
  0xf2   :  { %v134_v44 = vpack.c.bf16 %v128_v41, %v126_v40 }
  0xf3   :  { %v135_v45 = vpack.c.bf16 %v129_v43, %v127_v42  ;;  %v117_v46 = vpop.f32.mrb[4].mxu0 }
  0xf4   :  { %v118_v47 = vadd.f32 %v117_v46, %v49_v30  ;;  %v119_v48 = vpop.f32.mrb[5].mxu0 }
  0xf5   :  { %v120_v49 = vadd.f32 %v119_v48, %v53_v31  ;;  %v121_v50 = vpop.f32.mrb[6].mxu0  ;;  %305 = vmatprep.mubr.bf16.mxu0 %v135_v45 }
  0xf6   :  { %v122_v51 = vadd.f32 %v121_v50, %v49_v30  ;;  %v123_v52 = vpop.f32.mrb[7].mxu0  ;;  %306 = vmatmul.mubr.bf16.vlgmr.msra.gmra.mrb[8].mxu0 %v134_v44  ;;  %v130_v54 = vmax.f32 %v118_v47, 0.0 }
  0xf7   :  { %v124_v53 = vadd.f32 %v123_v52, %v53_v31  ;;  %v131_v56 = vmax.f32 %v120_v49, 0.0 }
  0xf8   :  { %v132_v55 = vmax.f32 %v122_v51, 0.0 }
  0xf9   :  { %v133_v57 = vmax.f32 %v124_v53, 0.0 }
  0xfa   :  { %v136_v58 = vpack.c.bf16 %v132_v55, %v130_v54 }
  0xfb   :  { %v137_v59 = vpack.c.bf16 %v133_v57, %v131_v56 }
  0xfd   :  { %313 = vmatprep.mubr.bf16.mxu1 %v137_v59 }
  0xfe   :  { %314 = vmatmul.mubr.bf16.vlgmr.msra.gmra.mrb[0].mxu1 %v136_v58 }
 0x1c9   :  { %v427_v61 = vpop.f32.mrb[8].mxu0 }
 0x1ca   :  { %v428_v62 = vpop.f32.mrb[9].mxu0 }
 0x1cb   :  { %v429_v0 = vadd.f32 %v428_v62, %v427_v61  ;;  %v430_v1 = vpop.f32.mrb[10].mxu0 }
 0x1cc   :  { %v431_v2 = vpop.f32.mrb[11].mxu0 }
 0x1cd   :  { %v432_v3 = vadd.f32 %v431_v2, %v430_v1  ;;  %v308_v4 = vadd.f32 %v429_v0, %v394_v63 }
 0x1cf   :  { %v325_v5 = vsel %vm324_vm1, %v308_v4, -1e+30  ;;  %v311_v6 = vadd.f32 %v432_v3, %v394_v63 }
 0x1d0   :  { %329 = vmax.xlane.f32.xlu0 %v325_v5 }
 0x1d1   :  { %v433_v7 = vpop.f32.mrb[0].mxu1  ;;  %v326_v11 = vsel %vm324_vm1, %v311_v6, -1e+30 }
 0x1d2   :  { %v434_v8 = vpop.f32.mrb[1].mxu1 }
 0x1d3   :  { %v435_v9 = vadd.f32 %v434_v8, %v433_v7  ;;  %v436_v10 = vpop.f32.mrb[2].mxu1 }
 0x1d4   :  { %v437_v12 = vpop.f32.mrb[3].mxu1  ;;  %331 = vmax.xlane.f32.xlu0 %v326_v11 }
 0x1d5   :  { %v438_v13 = vadd.f32 %v437_v12, %v436_v10  ;;  %v316_v14 = vadd.f32 %v435_v9, %v394_v63 }
 0x1d7   :  { %v327_v15 = vsel %vm324_vm1, %v316_v14, -1e+30  ;;  %v319_v16 = vadd.f32 %v438_v13, %v394_v63 }
 0x1d8   :  { %333 = vmax.xlane.f32.xlu1 %v327_v15 }
 0x1d9   :  { %v328_v17 = vsel %vm324_vm1, %v319_v16, -1e+30 }
 0x1dc   :  { %335 = vmax.xlane.f32.xlu1 %v328_v17 }
 0x25d   :  { %v330_v18 = vpop.xlane.xlu0 %329 }
 0x25e   :  { %v337_v19 = vsub.f32 %v325_v5, %v330_v18 }
 0x260   :  { %v341_v20 = vmul.f32 1.442695, %v337_v19 }
 0x261   :  { %v332_v21 = vpop.xlane.xlu0 %331 }
 0x262   :  { %481 = vpow2.f32 %v341_v20  ;;  %v338_v22 = vsub.f32 %v326_v11, %v332_v21 }
 0x264   :  { %v343_v23 = vmul.f32 1.442695, %v338_v22 }
 0x265   :  { %v334_v24 = vpop.xlane.xlu1 %333 }
 0x266   :  { %483 = vpow2.f32 %v343_v23  ;;  %v339_v25 = vsub.f32 %v327_v15, %v334_v24 }
 0x268   :  { %v345_v26 = vmul.f32 1.442695, %v339_v25 }
 0x269   :  { %v336_v27 = vpop.xlane.xlu1 %335 }
 0x26a   :  { %485 = vpow2.f32 %v345_v26  ;;  %v340_v28 = vsub.f32 %v328_v17, %v336_v27 }
 0x26c   :  { %v482_v29 = vpop.eup %481  ;;  %v347_v30 = vmul.f32 1.442695, %v340_v28 }
 0x26d   :  { %349 = vadd.xlane.f32.xlu0 %v482_v29 }
 0x26e   :  { %487 = vpow2.f32 %v347_v30 }
 0x270   :  { %v484_v31 = vpop.eup %483 }
 0x271   :  { %351 = vadd.xlane.f32.xlu1 %v484_v31 }
 0x274   :  { %v486_v32 = vpop.eup %485 }
 0x275   :  { %353 = vadd.xlane.f32.xlu0 %v486_v32 }
 0x278   :  { %v488_v33 = vpop.eup %487 }
 0x279   :  { %355 = vadd.xlane.f32.xlu1 %v488_v33 }
 0x2fa   :  { %v350_v34 = vpop.xlane.xlu0 %349 }
 0x2fb   :  { %489 = vrcp.f32 %v350_v34 }
 0x2fe   :  { %v352_v35 = vpop.xlane.xlu1 %351 }
 0x2ff   :  { %491 = vrcp.f32 %v352_v35 }
 0x302   :  { %v354_v36 = vpop.xlane.xlu0 %353 }
 0x303   :  { %493 = vrcp.f32 %v354_v36 }
 0x305   :  { %v490_v37 = vpop.eup %489 }
 0x306   :  { %v358_v38 = vmul.f32 %v490_v37, %v482_v29  ;;  %v356_v39 = vpop.xlane.xlu1 %355 }
 0x307   :  { %495 = vrcp.f32 %v356_v39 }
 0x308   :  { %v365_v40 = vsel %vm324_vm1, %v358_v38, %v308_v4 }
 0x309   :  { %v492_v41 = vpop.eup %491  ;;  %369 = vst [vmem:[#allocation5] sm:$0xff] %v365_v40 }
 0x30a   :  { %v360_v42 = vmul.f32 %v492_v41, %v484_v31 }
 0x30c   :  { %v366_v43 = vsel %vm324_vm1, %v360_v42, %v311_v6 }
 0x30d   :  { %v494_v44 = vpop.eup %493  ;;  %370 = vst [vmem:[#allocation5 + $0x8] sm:$0xff] %v366_v43 }
 0x30e   :  { %v362_v45 = vmul.f32 %v494_v44, %v486_v32 }
 0x310   :  { %v367_v46 = vsel %vm324_vm1, %v362_v45, %v316_v14 }
 0x311   :  { %v496_v47 = vpop.eup %495  ;;  %371 = vst [vmem:[#allocation5 + $0x10] sm:$0xff] %v367_v46 }
 0x312   :  { %v364_v48 = vmul.f32 %v496_v47, %v488_v33 }
 0x314   :  { %v368_v49 = vsel %vm324_vm1, %v364_v48, %v319_v16 }
 0x315   :  { %372 = vst [vmem:[#allocation5 + $0x18] sm:$0xff] %v368_v49 }
 0x316   :  { %530 = shalt.err (!%p527_p12)
}
 0x317   :  { %s531_s23 = scalar_lea.hbm %s656_s5, 512 }
 0x318   :  { %p532_p13 = scmp.ne.s32.totalorder %s656_s5, %s531_s23  ;;  %p535_p0 = scmp.lt.u32.totalorder %s531_s23, %s656_s5 }
 0x31a   :  { %p537_p1 = pnand %p535_p0, %p532_p13 }
 0x31c   :  { %540 = shalt.err (!%p537_p1)
}
 0x31d   :  { %s550_s28 = smov 128   ;;  %s551_s29 = smov 8  }
 0x31e   :  { %384 = dma.vmem_to_hbm [thread:$0]  %s379_s19, 512, %s656_s5, [#allocation4], %s550_s28, %s550_s28, %s551_s29  }
 0x31f   :  { %543 = dma.done.wait [#allocation4], 512  }
 0x320   :  { %544 = vsyncadd [#allocation4], 4294966784 }
 0x321   :  { %388 = vsyncpa [#allocation3], 1 }
 0x322   :  { %389 = vsyncpa [#allocation4], 1 }

</bundles_post_ra>
